<compile_context>
chip_gen: v7x
topology: tpu7x:2x2x1
jax: 0.10.0
libtpu: 0.0.40
codegen_flags: <defaults>
</compile_context>

<pallas_src>
import math

import jax
import jax.numpy as jnp
from jax import lax
from jax.experimental import pallas as pl
from jax.experimental.pallas import tpu as pltpu

K = 4          # group size (module default K=4)
BETA = 0.1     # temperature (module default beta=0.1)
EPS = 1e-12    # F.normalize eps
_K_SHIFT = int(math.log2(K)) if (K & (K - 1)) == 0 else None


def _group_mean_kernel(x_ref, vn_ref):
    """(TB, D) rows -> (TB//K, D) L2-normalized group means, stored bf16."""
    TB = x_ref.shape[0]
    Gt = TB // K
    # Linear sublane reduction: sum the K strided row slices of each group.
    acc = x_ref[pl.ds(0, Gt, stride=K), :].astype(jnp.float32)
    for k in range(1, K):
        acc = acc + x_ref[pl.ds(k, Gt, stride=K), :].astype(jnp.float32)
    v = acc * jnp.float32(1.0 / K)
    # F.normalize: v / max(||v||, eps) == v * rsqrt(max(||v||^2, eps^2))  (EUP)
    ss = jnp.sum(v * v, axis=-1, keepdims=True)
    inv = lax.rsqrt(jnp.maximum(ss, jnp.float32(EPS * EPS)))
    vn_ref[...] = (v * inv).astype(vn_ref.dtype)


def _partial_loss_kernel(x_ref, vn_ref, part_ref):
    """Per-tile sum of (logsumexp(logits) - target_logit) over TB rows."""
    i = pl.program_id(0)
    x = x_ref[...].astype(jnp.float32)                  # (TB, D)
    TB = x.shape[0]
    G = vn_ref.shape[0]
    Gt = TB // K

    # Row inverse norms (EUP); applied after the matmul (no xn materialized).
    ss = jnp.sum(x * x, axis=-1, keepdims=True)         # (TB, 1)
    inv_x = lax.rsqrt(jnp.maximum(ss, jnp.float32(EPS * EPS)))

    # bf16 MXU matmul with f32 accumulation: S = x @ vn.T -> (TB, G)
    s = lax.dot_general(
        x.astype(jnp.bfloat16), vn_ref[...],
        (((1,), (1,)), ((), ())),
        preferred_element_type=jnp.float32)
    logits = s * (inv_x * jnp.float32(1.0 / BETA))      # row scale + temperature

    # Cross entropy; label of local row r is i*Gt + (r >> log2(K)).
    m = jnp.max(logits, axis=-1, keepdims=True)
    lse = m + jnp.log(jnp.sum(jnp.exp(logits - m), axis=-1, keepdims=True))
    bi = lax.broadcasted_iota(jnp.int32, (TB, G), 0)
    ci = lax.broadcasted_iota(jnp.int32, (TB, G), 1)
    row_grp = (bi >> _K_SHIFT) if _K_SHIFT is not None else (bi // K)
    onehot = (ci == row_grp + i * Gt).astype(jnp.float32)
    tgt = jnp.sum(logits * onehot, axis=-1, keepdims=True)

    part_ref[0, 0] = jnp.sum(lse - tgt)


def local_loss(x, *, row_tile=512):
    """x: (B, D) float, B divisible by K. Returns scalar loss (float32)."""
    B, D = x.shape
    assert B % K == 0, "batch must be divisible by K"
    G = B // K

    # Row tile: multiple of K that divides B. ~512 rows keeps the double-buffered
    # f32 x tiles well inside v7x's 32 MiB scoped VMEM at large D.
    TB = min(row_tile, B)
    TB -= TB % K
    while B % TB:
        TB -= K
    nb = B // TB
    Gt = TB // K

    cparams = pltpu.CompilerParams(
        dimension_semantics=("parallel",),
        vmem_limit_bytes=32 * 1024 * 1024)

    # Phase 1: normalized group means in bf16 (native MXU dtype for phase 2,
    # half the VMEM for the resident vn operand).
    vn = pl.pallas_call(
        _group_mean_kernel,
        out_shape=jax.ShapeDtypeStruct((G, D), jnp.bfloat16),
        grid=(nb,),
        in_specs=[pl.BlockSpec((TB, D), lambda i: (i, 0))],
        out_specs=pl.BlockSpec((Gt, D), lambda i: (i, 0)),
        compiler_params=cparams,
    )(x)

    # Phase 2: per-tile partial CE sums; vn stays VMEM-resident (constant block).
    partials = pl.pallas_call(
        _partial_loss_kernel,
        out_shape=jax.ShapeDtypeStruct((nb, 1), jnp.float32),
        grid=(nb,),
        in_specs=[pl.BlockSpec((TB, D), lambda i: (i, 0)),
                  pl.BlockSpec((G, D), lambda i: (0, 0))],
        out_specs=pl.BlockSpec((1, 1), lambda i: (i, 0),
                               memory_space=pltpu.MemorySpace.SMEM),
        compiler_params=cparams,
    )(x, vn)

    return jnp.sum(partials) * (1.0 / B)


if __name__ == "__main__":
    # Small shapes consistent with the module: batch divisible by K=4.
    B, D = 8, 32
    key = jax.random.PRNGKey(0)
    x = jax.random.normal(key, (B, D), dtype=jnp.float32)

    loss = jax.block_until_ready(local_loss(x))

    # Plain-JAX f32 reference (PyTorch semantics) for sanity.
    v = x.reshape(B // K, K, D).mean(axis=1)
    vn = v / jnp.maximum(jnp.linalg.norm(v, axis=-1, keepdims=True), EPS)
    xn = x / jnp.maximum(jnp.linalg.norm(x, axis=-1, keepdims=True), EPS)
    logits = (xn @ vn.T) / BETA
    labels = jnp.arange(B) // K
    ref = jnp.mean(jax.nn.logsumexp(logits, axis=-1)
                   - logits[jnp.arange(B), labels])

    # Kernel feeds the MXU bf16 operands -> allow a small tolerance vs f32 ref.
    assert abs(float(loss) - float(ref)) < 2e-2, (float(loss), float(ref))

    print("KERNEL_OK")
</pallas_src>

<mosaic_0001>
module attributes {stable_mosaic.version = 11 : i64} {
  func.func @_group_mean_kernel(%arg0: i32, %arg1: memref<8x32xf32, #tpu.memory_space<vmem>>, %arg2: memref<2x32xbf16, #tpu.memory_space<vmem>>) attributes {dimension_semantics = [#tpu.dimension_semantics<parallel>], iteration_bounds = array<i64: 1>, scalar_prefetch = 0 : i64, scratch_operands = 0 : i64, tpu.core_type = #tpu.core_type<tc>, window_params = [{transform_indices = @transform_0, window_bounds = array<i64: 8, 32>}, {transform_indices = @transform_1, window_bounds = array<i64: 2, 32>}]} {
    %c0 = arith.constant 0 : index
    %c0_0 = arith.constant 0 : index
    %0 = tpu.strided_load %arg1[%c0, %c0_0] {strides = array<i32: 4, 1>} : memref<8x32xf32, #tpu.memory_space<vmem>>, vector<2x32xf32>
    %c1 = arith.constant 1 : index
    %c0_1 = arith.constant 0 : index
    %1 = tpu.strided_load %arg1[%c1, %c0_1] {strides = array<i32: 4, 1>} : memref<8x32xf32, #tpu.memory_space<vmem>>, vector<2x32xf32>
    %2 = arith.addf %0, %1 : vector<2x32xf32>
    %c2 = arith.constant 2 : index
    %c0_2 = arith.constant 0 : index
    %3 = tpu.strided_load %arg1[%c2, %c0_2] {strides = array<i32: 4, 1>} : memref<8x32xf32, #tpu.memory_space<vmem>>, vector<2x32xf32>
    %4 = arith.addf %2, %3 : vector<2x32xf32>
    %c3 = arith.constant 3 : index
    %c0_3 = arith.constant 0 : index
    %5 = tpu.strided_load %arg1[%c3, %c0_3] {strides = array<i32: 4, 1>} : memref<8x32xf32, #tpu.memory_space<vmem>>, vector<2x32xf32>
    %6 = arith.addf %4, %5 : vector<2x32xf32>
    %cst = arith.constant 2.500000e-01 : f32
    %7 = vector.broadcast %cst : f32 to vector<2x32xf32>
    %8 = arith.mulf %6, %7 : vector<2x32xf32>
    %9 = arith.mulf %8, %8 : vector<2x32xf32>
    %cst_4 = arith.constant dense<0.000000e+00> : vector<2xf32>
    %10 = vector.multi_reduction <add>, %9, %cst_4 [1] : vector<2x32xf32> to vector<2xf32>
    %11 = vector.shape_cast %10 : vector<2xf32> to vector<2x1xf32>
    %cst_5 = arith.constant 1.000000e-24 : f32
    %12 = vector.broadcast %cst_5 : f32 to vector<2x1xf32>
    %13 = arith.maximumf %11, %12 : vector<2x1xf32>
    %14 = math.rsqrt %13 : vector<2x1xf32>
    %15 = vector.broadcast %14 : vector<2x1xf32> to vector<2x32xf32>
    %16 = arith.mulf %8, %15 : vector<2x32xf32>
    %17 = arith.truncf %16 : vector<2x32xf32> to vector<2x32xbf16>
    %c0_6 = arith.constant 0 : index
    %c0_7 = arith.constant 0 : index
    %18 = vector.load %arg2[%c0_6, %c0_7] : memref<2x32xbf16, #tpu.memory_space<vmem>>, vector<2x32xbf16>
    tpu.vector_store %arg2[%c0_6, %c0_7], %17 {strides = array<i32>} : memref<2x32xbf16, #tpu.memory_space<vmem>>, vector<2x32xbf16>,
    return
  }
  func.func @transform_0(%arg0: i32) -> (i32, i32) {
    %c0_i32 = arith.constant 0 : i32
    %c0_i32_0 = arith.constant 0 : i32
    return %arg0, %c0_i32 : i32, i32
  }
  func.func @transform_1(%arg0: i32) -> (i32, i32) {
    %c0_i32 = arith.constant 0 : i32
    %c0_i32_0 = arith.constant 0 : i32
    return %arg0, %c0_i32 : i32, i32
  }
}

</mosaic_0001>

<bundles_post_ra>
// kernel: tpu_custom_call.1
= control target key start
LH: loop header
LB: loop body
LE: loop exit
PB: predicated region body
PF: predicated region fallthrough
CT: control target
= control target key end

     0   :  { %6 = vsyncpa [#allocation3], 0  ;;  %s146_s0 = inlined_call_operand.hbm [shape: f32[8,32], index: 0, kind: input, shape index: {}]   ;;  %s147_s1 = inlined_call_operand.hbm [shape: bf16[2,32], index: 1, kind: output, shape index: {}]  }
   0x1   :  { %7 = vsyncpa [#allocation4], 0  ;;  %s110_s6 = smov [#allocation2]   ;;  %s62_s10 = scalar_lea.hbm %s146_s0, 128 }
   0x2   :  { %s14_s7 = sshll.u32 %s110_s6, 4  ;;  %p63_p0 = scmp.ne.s32.totalorder %s146_s0, %s62_s10  ;;  %s15_s7 = int_to_ptr.vmem [resolvable:$true] %s14_s7 }
   0x3   :  { %p66_p1 = scmp.lt.u32.totalorder %s62_s10, %s146_s0 }
   0x5   :  { %p68_p2 = pnand %p66_p1, %p63_p0 }
   0x7   :  { %71 = shalt.err (!%p68_p2)
}
   0x8   :  { %s72_s15 = scalar_lea.vmem %s15_s7, 128  ;;  %p77_p4 = scmp.lt.s32.totalorder %s15_s7, %s15_s7 }
   0x9   :  { %p73_p3 = scmp.ne.s32.totalorder %s15_s7, %s72_s15  ;;  %p78_p5 = scmp.lt.s32.totalorder %s72_s15, %s72_s15 }
   0xb   :  { %p79_p6 = por %p78_p5, %p77_p4 }
   0xd   :  { %p80_p7 = pnand %p79_p6, %p73_p3 }
   0xf   :  { %83 = shalt.err (!%p80_p7)
}
  0x10   :  { %17 = dma.hbm_to_vmem [thread:$0]  %s146_s0, 128, %s15_s7, [#allocation3]  }
  0x11   :  { %106 = dma.done.wait [#allocation3], 128  }
  0x12   :  { %107 = vsyncadd [#allocation3], 4294967168  ;;  %v21_v0 = vld [vmem:[#allocation2] ss:$4 sm:$0x3]  ;;  %vm33_vm0 = vcmask 254976  }
  0x13   :  { %v23_v1 = vld [vmem:[#allocation2 + $0x1] ss:$4 sm:$0x3]  ;;  %v26_v3 = vld [vmem:[#allocation2 + $0x2] ss:$4 sm:$0x3] }
  0x14   :  { %v24_v2 = vadd.f32 %v23_v1, %v21_v0  ;;  %v29_v4 = vld [vmem:[#allocation2 + $0x3] ss:$4 sm:$0x3]  ;;  %s111_s18 = smov [#allocation5]   ;;  %vm41_vm1 = vcmask 253952  }
  0x15   :  { %s49_s0 = sshll.u32 %s111_s18, 4  ;;  %s50_s0 = int_to_ptr.vmem [resolvable:$true] %s49_s0 }
  0x16   :  { %v27_v5 = vadd.f32 %v26_v3, %v24_v2  ;;  %s84_s19 = scalar_lea.vmem %s50_s0, 16  ;;  %s88_s20 = scalar_lea.vmem %s50_s0, 32 }
  0x17   :  { %p85_p8 = scmp.ne.s32.totalorder %s50_s0, %s84_s19  ;;  %p89_p9 = scmp.lt.s32.totalorder %s50_s0, %s50_s0 }
  0x18   :  { %v30_v6 = vadd.f32 %v29_v4, %v27_v5  ;;  %p90_p10 = scmp.lt.s32.totalorder %s88_s20, %s84_s19 }
  0x1a   :  { %v31_v7 = vmul.f32 0.25, %v30_v6  ;;  %p91_p11 = por %p90_p10, %p89_p9 }
  0x1c   :  { %v32_v8 = vmul.f32 %v31_v7, %v31_v7  ;;  %p92_p12 = pnand %p91_p11, %p85_p8 }
  0x1e   :  { %v34_v9 = vsel %vm33_vm0, %v32_v8, 0.0 }
  0x1f   :  { %35 = vadd.xlane.f32.xlu0 %v34_v9 }
  0xac   :  { %v36_v10 = vpop.xlane.xlu0 %35 }
  0xad   :  { %v37_v11 = vmax.f32 %v36_v10, 1e-24 }
  0xaf   :  { %60 = vrsqrt.f32 %v37_v11 }
  0xb9   :  { %v61_v12 = vpop.eup %60 }
  0xba   :  { %v39_v13 = vmul.f32 %v61_v12, %v31_v7 }
  0xbc   :  { %v40_v14 = vpack.c.bf16 %v39_v13, %v39_v13 }
  0xbe   :  { %42 = vst.msk [vmem:[#allocation5] sm:$0x1] %vm41_vm1, %v40_v14 }
  0xbf   :  { %95 = shalt.err (!%p92_p12)
}
  0xc0   :  { %s96_s23 = scalar_lea.hbm %s147_s1, 16 }
  0xc1   :  { %p97_p13 = scmp.ne.s32.totalorder %s147_s1, %s96_s23  ;;  %p100_p0 = scmp.lt.u32.totalorder %s96_s23, %s147_s1 }
  0xc3   :  { %p102_p1 = pnand %p100_p0, %p97_p13 }
  0xc5   :  { %105 = shalt.err (!%p102_p1)
}
  0xc6   :  { %52 = dma.vmem_to_hbm [thread:$0]  %s50_s0, 16, %s147_s1, [#allocation4]  }
  0xc7   :  { %108 = dma.done.wait [#allocation4], 16  }
  0xc8   :  { %109 = vsyncadd [#allocation4], 4294967280 }
  0xc9   :  { %56 = vsyncpa [#allocation3], 1 }
  0xca   :  { %57 = vsyncpa [#allocation4], 1 }

</bundles_post_ra>
